<compile_context>
chip_gen: v5e
topology: v5e:2x2
jax: 0.10.0
libtpu: 0.0.40
codegen_flags: <defaults>
</compile_context>

<pallas_src>
import functools

import jax
import jax.numpy as jnp
from jax.experimental import pallas as pl
from jax.experimental.pallas import tpu as pltpu


def _round_up(x: int, m: int) -> int:
    return ((x + m - 1) // m) * m


# ---------------------------------------------------------------------------
# Fast path (small vocab): table resident in VMEM, one-hot gather on the MXU.
# ---------------------------------------------------------------------------
def _embedding_resident_kernel(ids_ref, table_ref, out_ref):
    ids = ids_ref[...]                                            # (T, 1) int32
    t_blk = ids.shape[0]
    vocab = table_ref.shape[0]
    col = jax.lax.broadcasted_iota(jnp.int32, (t_blk, vocab), 1)  # (T, V)
    onehot = (ids == col).astype(table_ref.dtype)                 # (T, V)
    rows = jnp.dot(
        onehot,
        table_ref[...],
        preferred_element_type=jnp.float32,
        precision=jax.lax.Precision.HIGHEST,  # exact row selection for f32 tables
    )
    out_ref[...] = rows.astype(out_ref.dtype)


# ---------------------------------------------------------------------------
# General path (large vocab): table stays in HBM; T row DMAs in flight per step.
# ---------------------------------------------------------------------------
def _embedding_dma_kernel(ids_ref, table_hbm, out_ref, row_buf, sems, *,
                          tokens_per_block: int):
    base = pl.program_id(0) * tokens_per_block
    copies = []
    for t in range(tokens_per_block):          # static unroll; all DMAs in flight
        tok = ids_ref[base + t]                # scalar read from SMEM prefetch
        cp = pltpu.make_async_copy(
            table_hbm.at[pl.ds(tok, 1), :],    # (1, D) row in HBM (dynamic offset)
            row_buf.at[pl.ds(t, 1), :],        # (1, D) slot in VMEM scratch
            sems.at[t],
        )
        cp.start()
        copies.append(cp)
    for cp in copies:
        cp.wait()
    out_ref[...] = row_buf[...]


def embedding_forward(ids: jax.Array, table: jax.Array, *,
                      force_dma_gather: bool = False) -> jax.Array:
    """Pallas equivalent of Embedding.forward (pure row gather).

    ids   : (batch, seq) integer token ids.
    table : (vocab_size, d_model) embedding weights.
    returns (batch, seq, d_model) of table.dtype.
    """
    B, S = ids.shape
    V, D = table.shape
    N = B * S

    # Clamp ids so out-of-range ids can never turn into an OOB HBM DMA.
    flat = jnp.clip(ids.reshape(-1).astype(jnp.int32), 0, V - 1)

    itemsize = jnp.dtype(table.dtype).itemsize
    sublane = 8 * max(1, 4 // itemsize)        # 8 for f32, 16 for bf16, 32 for int8

    table_bytes = V * D * itemsize
    # Resident-table fast path only when 2x (double-buffer) table + blocks fit
    # comfortably under the 32 MiB scoped VMEM we request (safe on v5e/v6e/v7x),
    # and when the one-hot matmul stays cheap.
    use_resident = (not force_dma_gather) and (table_bytes <= 8 * 1024 * 1024) and (V <= 4096)

    if use_resident:
        tokens_per_block = min(256, _round_up(N, sublane))
    else:
        # Keep the unrolled DMA issue loop modest.
        tokens_per_block = min(32, _round_up(N, sublane))
    tokens_per_block = _round_up(tokens_per_block, sublane)

    n_pad = _round_up(N, tokens_per_block)
    if n_pad != N:
        flat = jnp.pad(flat, (0, n_pad - N))   # pad with a valid id; sliced off below
    grid = (n_pad // tokens_per_block,)

    compiler_params = pltpu.CompilerParams(
        dimension_semantics=("parallel",),               # 2 TCs on v7x; neutral elsewhere
        vmem_limit_bytes=32 * 1024 * 1024,               # raise v5e's 16 MiB default
    )

    if use_resident:
        ids_col = flat.reshape(n_pad, 1)                 # (T, 1) blocks, T % 8 == 0
        out_flat = pl.pallas_call(
            _embedding_resident_kernel,
            out_shape=jax.ShapeDtypeStruct((n_pad, D), table.dtype),
            grid_spec=pltpu.PrefetchScalarGridSpec(
                num_scalar_prefetch=0,
                grid=grid,
                in_specs=[
                    pl.BlockSpec((tokens_per_block, 1), lambda i: (i, 0)),
                    # Full table as one block with a constant index_map:
                    # DMA'd from HBM once, then resident in VMEM.
                    pl.BlockSpec((V, D), lambda i: (0, 0)),
                ],
                out_specs=pl.BlockSpec((tokens_per_block, D), lambda i: (i, 0)),
            ),
            compiler_params=compiler_params,
        )(ids_col, table)
    else:
        # TODO(synk): for very long sequences, chunk the pallas_call over the
        # token axis so the scalar-prefetched ids stay small in SMEM.
        out_flat = pl.pallas_call(
            functools.partial(_embedding_dma_kernel,
                              tokens_per_block=tokens_per_block),
            out_shape=jax.ShapeDtypeStruct((n_pad, D), table.dtype),
            grid_spec=pltpu.PrefetchScalarGridSpec(
                num_scalar_prefetch=1,                   # flat ids -> SMEM
                grid=grid,
                in_specs=[pl.BlockSpec(memory_space=pl.ANY)],   # table stays in HBM
                out_specs=pl.BlockSpec((tokens_per_block, D), lambda i, ids: (i, 0)),
                scratch_shapes=[
                    pltpu.VMEM((tokens_per_block, D), table.dtype),
                    pltpu.SemaphoreType.DMA((tokens_per_block,)),
                ],
            ),
            compiler_params=compiler_params,
        )(flat, table)

    return out_flat[:N].reshape(B, S, D)


if __name__ == "__main__":
    # Small shapes consistent with the module: vocab=32, d_model=128 (lane-dense),
    # batch=2, seq=8.
    vocab_size = 32
    d_model = 128
    batch = 2
    seq = 8
    pad_idx = 0
    pad_idx = pad_idx % vocab_size            # normalize negative padding_idx like torch

    key = jax.random.PRNGKey(0)
    k_w, k_ids = jax.random.split(key)

    # nn.Embedding init: N(0,1) weights with the pad row zeroed.
    table = jax.random.normal(k_w, (vocab_size, d_model), dtype=jnp.float32)
    table = table.at[pad_idx].set(0.0)

    ids = jax.random.randint(k_ids, (batch, seq), 0, vocab_size, dtype=jnp.int32)
    ids = ids.at[0, 0].set(pad_idx)
    ids = ids.at[1, 3].set(pad_idx)

    ref = jnp.take(table, ids, axis=0)        # pure-gather reference (torch forward)

    # Fast path: resident VMEM table + one-hot MXU gather.
    out = embedding_forward(ids, table)
    out = jax.block_until_ready(out)
    assert out.shape == (batch, seq, d_model)
    assert jnp.allclose(out, ref, rtol=1e-5, atol=1e-5), "resident-path mismatch"

    # General path: HBM table + per-block row DMAs (exercised explicitly).
    out_dma = embedding_forward(ids, table, force_dma_gather=True)
    out_dma = jax.block_until_ready(out_dma)
    assert jnp.allclose(out_dma, ref), "dma-gather-path mismatch"

    print("KERNEL_OK")
</pallas_src>

<mosaic_0001>
module attributes {stable_mosaic.version = 11 : i64} {
  func.func @_embedding_resident_kernel(%arg0: i32, %arg1: memref<16x1xi32, #tpu.memory_space<vmem>>, %arg2: memref<32x128xf32, #tpu.memory_space<vmem>>, %arg3: memref<16x128xf32, #tpu.memory_space<vmem>>) attributes {dimension_semantics = [#tpu.dimension_semantics<parallel>], iteration_bounds = array<i64: 1>, scalar_prefetch = 0 : i64, scratch_operands = 0 : i64, tpu.core_type = #tpu.core_type<tc>, window_params = [{transform_indices = @transform_0, window_bounds = array<i64: 16, 1>}, {pipeline_mode = #tpu.pipeline_mode<synchronous>, transform_indices = @transform_1, window_bounds = array<i64: 32, 128>}, {transform_indices = @transform_2, window_bounds = array<i64: 16, 128>}]} {
    %c0 = arith.constant 0 : index
    %c0_0 = arith.constant 0 : index
    %0 = vector.load %arg1[%c0, %c0_0] : memref<16x1xi32, #tpu.memory_space<vmem>>, vector<16x1xi32>
    %1 = tpu.iota {dimensions = array<i32: 1>} : vector<16x32xi32>
    %2 = vector.broadcast %0 : vector<16x1xi32> to vector<16x32xi32>
    %3 = arith.cmpi eq, %2, %1 : vector<16x32xi32>
    %4 = arith.extui %3 : vector<16x32xi1> to vector<16x32xi32>
    %5 = arith.sitofp %4 : vector<16x32xi32> to vector<16x32xf32>
    %c0_1 = arith.constant 0 : index
    %c0_2 = arith.constant 0 : index
    %6 = vector.load %arg2[%c0_1, %c0_2] : memref<32x128xf32, #tpu.memory_space<vmem>>, vector<32x128xf32>
    %cst = arith.constant dense<0.000000e+00> : vector<16x128xf32>
    %7 = tpu.matmul %5, %6, %cst {dimension_numbers = #tpu.dot_dimension_numbers<[1], [0], [0], [1], [0, 0, 1, 1], [], []>, precision = #tpu.contract_precision<fp32>} : vector<16x32xf32>, vector<32x128xf32>, vector<16x128xf32> -> vector<16x128xf32>
    %c0_3 = arith.constant 0 : index
    %c0_4 = arith.constant 0 : index
    %8 = vector.load %arg3[%c0_3, %c0_4] : memref<16x128xf32, #tpu.memory_space<vmem>>, vector<16x128xf32>
    tpu.vector_store %arg3[%c0_3, %c0_4], %7 {strides = array<i32>} : memref<16x128xf32, #tpu.memory_space<vmem>>, vector<16x128xf32>,
    return
  }
  func.func @transform_0(%arg0: i32) -> (i32, i32) {
    %c0_i32 = arith.constant 0 : i32
    %c0_i32_0 = arith.constant 0 : i32
    return %arg0, %c0_i32 : i32, i32
  }
  func.func @transform_1(%arg0: i32) -> (i32, i32) {
    %c0_i32 = arith.constant 0 : i32
    %c0_i32_0 = arith.constant 0 : i32
    %c0_i32_1 = arith.constant 0 : i32
    return %c0_i32, %c0_i32_0 : i32, i32
  }
  func.func @transform_2(%arg0: i32) -> (i32, i32) {
    %c0_i32 = arith.constant 0 : i32
    %c0_i32_0 = arith.constant 0 : i32
    return %arg0, %c0_i32 : i32, i32
  }
}

</mosaic_0001>

<bundles_post_ra>
// kernel: tpu_custom_call.1
= control target key start
LH: loop header
LB: loop body
LE: loop exit
PB: predicated region body
PF: predicated region fallthrough
CT: control target
= control target key end

     0   :  { %7 = vsyncpa [#allocation3], 0  ;;  %s414_s0 = inlined_call_operand.vmem [shape: s32[16,1], index: 0, kind: input, shape index: {}]   ;;  %s415_s1 = inlined_call_operand.hbm [shape: f32[32,128], index: 1, kind: input, shape index: {}]   ;;  %s416_s2 = inlined_call_operand.hbm [shape: f32[16,128], index: 2, kind: output, shape index: {}]  }
   0x1   :  { %8 = vsyncpa [#allocation4], 0  ;;  %s15_s11 = sshll.u32 %s415_s1, 4  ;;  %s367_s12 = smov [#allocation2]   ;;  %s16_s11 = int_to_ptr.hbm [resolvable:$true] %s15_s11 }
   0x2   :  { %s17_s13 = sshll.u32 %s367_s12, 4  ;;  %s368_s14 = smov 128   ;;  %s18_s13 = int_to_ptr.vmem [resolvable:$true] %s17_s13 }
   0x3   :  { %s369_s15 = smov 8  }
   0x4   :  { %23 = dma.hbm_to_vmem [thread:$0]  %s16_s11, 512, %s18_s13, [#allocation3], %s368_s14, %s368_s14, %s369_s15  }
   0x5   :  { %363 = dma.done.wait [#allocation3], 512  }
   0x6   :  { %364 = vsyncadd [#allocation3], 4294966784  ;;  %v370_v0 = vmov 0   ;;  %v29_v1 = vld [vmem:[%s414_s0 + $0x8] sm:$0xff]  ;;  %v47_v2 = vld [vmem:[#allocation2 + $0x18] sm:$0xff]  ;;  %v30_v27 = vlaneseq  ;;  %vm48_vm0 = vcmask 261120  }
   0x7   :  { %314 = vset.pattern.permute.xlu0 %v370_v0  ;;  %v67_v3 = vand.u32 4294901760, %v47_v2  ;;  %v46_v4 = vld [vmem:[#allocation2 + $0x10] sm:$0xff]  ;;  %v45_v5 = vld [vmem:[#allocation2 + $0x8] sm:$0xff]  ;;  %v28_v12 = vld [vmem:[%s414_s0] sm:$0xff]  ;;  %v371_v30 = vmov 0.0   ;;  %s372_s0 = smov [#allocation5]  }
   0x8   :  { %36 = vperm.xlu0 %314, %v29_v1   ;;  %v69_v6 = vand.u32 4294901760, %v46_v4  ;;  %v71_v7 = vand.u32 4294901760, %v45_v5  ;;  %v44_v21 = vld [vmem:[#allocation2] sm:$0xff]  ;;  %v31_v28 = vand.u32 127, %v30_v27  ;;  %s277_s19 = sshll.u32 %s372_s0, 4  ;;  %s279_s22 = sshll.u32 %s416_s2, 4  ;;  %s278_s19 = int_to_ptr.vmem [resolvable:$true] %s277_s19  ;;  %s280_s22 = int_to_ptr.hbm [resolvable:$true] %s279_s22 }
   0x9   :  { %v105_v8 = vsub.f32 %v47_v2, %v67_v3  ;;  %300 = vmatpush.msra.mxu2 %v67_v3  ;;  %68 = vmatpush.msra.mxu0 %v67_v3  ;;  %v73_v22 = vand.u32 4294901760, %v44_v21 }
   0xa   :  { %v111_v9 = vsub.f32 %v46_v4, %v69_v6  ;;  %v117_v10 = vsub.f32 %v45_v5, %v71_v7 }
   0xb   :  { %v106_v11 = vand.u32 4294901760, %v105_v8  ;;  %301 = vmatpush.msra.mxu2 %v69_v6  ;;  %70 = vmatpush.msra.mxu0 %v69_v6  ;;  %v123_v23 = vsub.f32 %v44_v21, %v73_v22 }
   0xc   :  { %v112_v13 = vand.u32 4294901760, %v111_v9  ;;  %v118_v14 = vand.u32 4294901760, %v117_v10 }
   0xd   :  { %v107_v15 = vsub.f32 %v105_v8, %v106_v11  ;;  %302 = vmatpush.msra.mxu2 %v71_v7  ;;  %72 = vmatpush.msra.mxu0 %v71_v7  ;;  %v124_v24 = vand.u32 4294901760, %v123_v23 }
   0xe   :  { %v113_v16 = vsub.f32 %v111_v9, %v112_v13  ;;  %v119_v17 = vsub.f32 %v117_v10, %v118_v14 }
   0xf   :  { %v108_v18 = vand.u32 4294901760, %v107_v15  ;;  %303 = vmatpush.msra.mxu2 %v73_v22  ;;  %74 = vmatpush.msra.mxu0 %v73_v22  ;;  %v125_v25 = vsub.f32 %v123_v23, %v124_v24 }
  0x10   :  { %33 = vperm.xlu0 %314, %v28_v12   ;;  %v114_v19 = vand.u32 4294901760, %v113_v16  ;;  %v120_v20 = vand.u32 4294901760, %v119_v17 }
  0x11   :  { %304 = vmatpush.msra.mxu3 %v108_v18  ;;  %109 = vmatpush.msra.mxu1 %v108_v18  ;;  %v126_v26 = vand.u32 4294901760, %v125_v25 }
  0x12   :  { %151 = vmatpush.msrb.mxu2 %v105_v8  ;;  %220 = vmatpush.msrb.mxu0 %v106_v11 }
  0x13   :  { %305 = vmatpush.msra.mxu3 %v114_v19  ;;  %115 = vmatpush.msra.mxu1 %v114_v19 }
  0x14   :  { %154 = vmatpush.msrb.mxu2 %v111_v9  ;;  %224 = vmatpush.msrb.mxu0 %v112_v13 }
  0x15   :  { %306 = vmatpush.msra.mxu3 %v120_v20  ;;  %121 = vmatpush.msra.mxu1 %v120_v20 }
  0x16   :  { %157 = vmatpush.msrb.mxu2 %v117_v10  ;;  %228 = vmatpush.msrb.mxu0 %v118_v14 }
  0x17   :  { %307 = vmatpush.msra.mxu3 %v126_v26  ;;  %127 = vmatpush.msra.mxu1 %v126_v26 }
  0x18   :  { %160 = vmatpush.msrb.mxu2 %v123_v23  ;;  %232 = vmatpush.msrb.mxu0 %v124_v24 }
  0x19   :  { %185 = vmatpush.msrb.mxu3 %v67_v3  ;;  %255 = vmatpush.msrb.mxu1 %v67_v3 }
  0x1b   :  { %187 = vmatpush.msrb.mxu3 %v69_v6  ;;  %257 = vmatpush.msrb.mxu1 %v69_v6 }
  0x1d   :  { %189 = vmatpush.msrb.mxu3 %v71_v7  ;;  %259 = vmatpush.msrb.mxu1 %v71_v7 }
  0x1f   :  { %191 = vmatpush.msrb.mxu3 %v73_v22  ;;  %261 = vmatpush.msrb.mxu1 %v73_v22 }
  0x7a   :  { %v37_v29 = vpop.permute.xlu0 %36 }
  0x7b   :  { %vm39_vm1 = vcmp.eq.s32.totalorder %v37_v29, %v31_v28 }
  0x7c   :  { %v293_v31 = vsel %vm39_vm1, 1.0, %v371_v30 }
  0x7d   :  { %v53_v32 = vsel %vm48_vm0, %v293_v31, 0  ;;  %295 = vmatmul.msk.f32.vlgmr.msra.gmra.mxu3 %vm48_vm0, %v293_v31 }
  0x7e   :  { %v84_v33 = vsub.f32 %v53_v32, %v53_v32 }
  0x80   :  { %v85_v34 = vand.u32 4294901760, %v84_v33 }
  0x82   :  { %v34_v35 = vpop.permute.xlu0 %33  ;;  %v86_v36 = vsub.f32 %v84_v33, %v85_v34 }
  0x83   :  { %vm38_vm2 = vcmp.eq.s32.totalorder %v34_v35, %v31_v28 }
  0x84   :  { %v292_v37 = vsel %vm38_vm2, 1.0, %v371_v30  ;;  %v87_v38 = vand.u32 4294901760, %v86_v36 }
  0x85   :  { %v50_v39 = vsel %vm48_vm0, %v292_v37, 0  ;;  %294 = vmatmul.msk.f32.vlgmr.msra.gmra.mxu1 %vm48_vm0, %v292_v37 }
  0x86   :  { %v76_v40 = vsub.f32 %v50_v39, %v50_v39  ;;  %88 = vmatmul.f32.vlgmr.msra.gmra.mxu2 %v87_v38 }
  0x88   :  { %v77_v41 = vand.u32 4294901760, %v76_v40 }
  0x8a   :  { %195 = vmatmul.f32.vlgmr.msrb.gmra.mxu3 %v77_v41  ;;  %v78_v42 = vsub.f32 %v76_v40, %v77_v41 }
  0x8c   :  { %v79_v43 = vand.u32 4294901760, %v78_v42 }
  0x8d   :  { %298 = vmatmul.msk.f32.vlgmr.msrb.gmra.mxu1 %vm48_vm0, %v292_v37 }
  0x8e   :  { %80 = vmatmul.f32.vlgmr.msra.gmra.mxu0 %v79_v43  ;;  %163 = vmatmul.f32.vlgmr.msrb.gmra.mxu2 %v76_v40 }
  0x92   :  { %201 = vmatmul.f32.gmra.mxu3 %v85_v34 }
  0x95   :  { %299 = vmatmul.msk.f32.gmra.mxu1 %vm48_vm0, %v293_v31 }
  0x96   :  { %168 = vmatmul.f32.gmra.mxu2 %v84_v33  ;;  %296 = vmatmul.msk.f32.vlgmr.msrb.gmra.mxu0 %vm48_vm0, %v292_v37 }
  0x9e   :  { %297 = vmatmul.msk.f32.gmra.mxu0 %vm48_vm0, %v293_v31 }
 0x100   :  { %v134_v44 = vpop.f32.mrf.mxu3 }
 0x102   :  { %v130_v46 = vpop.f32.mrf.mxu1 }
 0x109   :  { %v89_v45 = vpop.f32.mrf.mxu2 }
 0x10a   :  { %v264_v54 = vpop.f32.mrf.mxu1  ;;  %v135_v56 = vadd.f32 %v134_v44, %v89_v45 }
 0x10b   :  { %v81_v47 = vpop.f32.mrf.mxu0 }
 0x10c   :  { %v131_v48 = vadd.f32 %v130_v46, %v81_v47 }
 0x10d   :  { %v196_v49 = vpop.f32.mrf.mxu3 }
 0x111   :  { %v164_v50 = vpop.f32.mrf.mxu2 }
 0x112   :  { %v165_v51 = vadd.f32 %v164_v50, %v131_v48  ;;  %v268_v0 = vpop.f32.mrf.mxu1 }
 0x113   :  { %v235_v52 = vpop.f32.mrf.mxu0 }
 0x114   :  { %v197_v53 = vadd.f32 %v196_v49, %v165_v51 }
 0x115   :  { %v202_v60 = vpop.f32.mrf.mxu3 }
 0x116   :  { %v236_v55 = vadd.f32 %v235_v52, %v197_v53 }
 0x118   :  { %v265_v57 = vadd.f32 %v264_v54, %v236_v55 }
 0x119   :  { %v169_v58 = vpop.f32.mrf.mxu2 }
 0x11a   :  { %271 = vst [vmem:[#allocation5] sm:$0xff] %v265_v57  ;;  %v170_v59 = vadd.f32 %v169_v58, %v135_v56 }
 0x11b   :  { %v239_v62 = vpop.f32.mrf.mxu0 }
 0x11c   :  { %v203_v61 = vadd.f32 %v202_v60, %v170_v59 }
 0x11e   :  { %v240_v63 = vadd.f32 %v239_v62, %v203_v61 }
 0x120   :  { %v269_v1 = vadd.f32 %v268_v0, %v240_v63 }
 0x122   :  { %272 = vst [vmem:[#allocation5 + $0x8] sm:$0xff] %v269_v1 }
 0x123   :  { %285 = dma.vmem_to_hbm [thread:$0]  %s278_s19, 256, %s280_s22, [#allocation4], %s368_s14, %s368_s14, %s369_s15  }
 0x124   :  { %365 = dma.done.wait [#allocation4], 256  }
 0x125   :  { %366 = vsyncadd [#allocation4], 4294967040 }
 0x126   :  { %290 = vsyncpa [#allocation3], 1 }
 0x127   :  { %291 = vsyncpa [#allocation4], 1 }

</bundles_post_ra>
